<compile_context>
chip_gen: v7x
topology: tpu7x:2x2x1
jax: 0.10.0
libtpu: 0.0.40
codegen_flags: <defaults>
</compile_context>

<pallas_src>
import jax
import jax.numpy as jnp
from jax.experimental import pallas as pl
from jax.experimental.pallas import tpu as pltpu


# ---------------------------------------------------------------------------
# Kernel
# ---------------------------------------------------------------------------
def mlp_kernel(x_ref, w1_ref, b1_ref, w2_ref, b2_ref, w3_ref, b3_ref, o_ref):
    # Cast the f32 activation tile to the MXU dtype in-kernel (free VPU work
    # hidden under the MXU) instead of an extra wrapper-side HBM pass.
    x = x_ref[...].astype(w1_ref.dtype)

    # Layer 1: (TB, L) @ (L, H) -> f32 accumulate; bias + ReLU stay f32 (VPU).
    h1 = jnp.dot(x, w1_ref[...], preferred_element_type=jnp.float32)
    h1 = jnp.maximum(h1 + b1_ref[...], 0.0)

    # Layer 2: (TB, H) @ (H, H).
    h2 = jnp.dot(h1.astype(w2_ref.dtype), w2_ref[...],
                 preferred_element_type=jnp.float32)
    h2 = jnp.maximum(h2 + b2_ref[...], 0.0)

    # Layer 3: (TB, H) @ (H, L).
    # NOTE: for L < 128 the output last dim is lane-sparse -> masked vst; this
    # is negligible at these sizes.  If the epilogue store ever shows up in a
    # profile, present a lane-dense (B*L/128, 128) output view instead.
    out = jnp.dot(h2.astype(w3_ref.dtype), w3_ref[...],
                  preferred_element_type=jnp.float32)
    o_ref[...] = (out + b3_ref[...]).astype(o_ref.dtype)


# ---------------------------------------------------------------------------
# Tiling / VMEM budgeting helpers
# ---------------------------------------------------------------------------
def _pick_tile_b(B, cap=512):
    """Largest (8,128)-legal batch tile <= cap, preferring an even grid >= 2."""
    cands = [tb for tb in (512, 256, 128, 64, 32, 16, 8)
             if tb <= cap and B % tb == 0]
    for tb in cands:                    # even number of steps >= 2 (v7x megacore)
        nb = B // tb
        if nb >= 2 and nb % 2 == 0:
            return tb
    for tb in cands:                    # at least 2 steps (pipelining)
        if B // tb >= 2:
            return tb
    return cands[0] if cands else B     # fall back: single full-batch block


def _vmem_limit_bytes(TB, L, H, x_dtype, out_dtype, compute_dtype, weight_bufs):
    """Explicit scoped-VMEM budget from the real working set, per generation."""
    cb = jnp.dtype(compute_dtype).itemsize
    weights = (L * H + H * H + H * L) * cb * weight_bufs      # resident bf16 weights
    biases = (2 * H + L) * 4 * weight_bufs                    # resident f32 biases
    act_io = 2 * TB * L * (jnp.dtype(x_dtype).itemsize        # double-buffered x tile
                           + jnp.dtype(out_dtype).itemsize)   # + out tile
    inter = 2 * TB * H * (4 + cb)                             # h1/h2 f32 + bf16 casts
    working = weights + biases + act_io + inter

    try:
        phys = pltpu.get_tpu_info().vmem_capacity_bytes       # per-generation VMEM
    except Exception:
        phys = 64 << 20                                       # v7x per-TC floor
    cap = int(phys * 0.85)                                    # leave headroom

    if working > cap:
        # Beyond this point the resident-weight layout no longer fits; the right
        # design adds a grid axis tiling W2's hidden dim with an f32 accumulator
        # scratch ("arbitrary" semantics).  Demo shapes never get close.
        raise NotImplementedError(
            f"resident-weight working set {working / 2**20:.1f} MiB exceeds the "
            f"~{cap / 2**20:.0f} MiB VMEM budget; tile W2 over an extra grid axis.")

    return min(cap, max(32 << 20, int(working * 1.25) + (2 << 20)))


# ---------------------------------------------------------------------------
# Wrapper
# ---------------------------------------------------------------------------
def mlp_forward(x, w1, b1, w2, b2, w3, b3):
    """Fused MLP forward.  Expects weights already in the compute dtype (bf16)
    and biases in f32 -- see to_compute_params(); no per-call casts here."""
    B, L = x.shape
    H = w1.shape[1]          # 4 * L
    TB = _pick_tile_b(B)
    nb = B // TB
    compute_dtype = w1.dtype

    cbytes = jnp.dtype(compute_dtype).itemsize
    cost = pl.CostEstimate(
        flops=2 * B * (L * H + H * H + H * L),
        transcendentals=0,
        bytes_accessed=(
            B * L * x.dtype.itemsize                 # x (f32, cast in-kernel)
            + (L * H + H * H + H * L) * cbytes       # bf16 weights (read once)
            + (2 * H + L) * 4                        # f32 biases
            + B * L * x.dtype.itemsize               # out
        ),
    )

    def build(single_buffer_weights):
        spec_kwargs = {}
        if single_buffer_weights:
            # Weights/biases have constant block indices -> one resident buffer
            # is enough; avoids doubling the weight VMEM footprint.
            spec_kwargs["pipeline_mode"] = pl.Buffered(1)

        def const(shape):
            return pl.BlockSpec(shape, lambda i: (0,) * len(shape), **spec_kwargs)

        weight_bufs = 1 if single_buffer_weights else 2
        return pl.pallas_call(
            mlp_kernel,
            out_shape=jax.ShapeDtypeStruct((B, L), x.dtype),
            grid=(nb,),
            in_specs=[
                pl.BlockSpec((TB, L), lambda i: (i, 0)),   # activations: pipelined
                const((L, H)),                             # weights/biases: resident
                const((1, H)),
                const((H, H)),
                const((1, H)),
                const((H, L)),
                const((1, L)),
            ],
            out_specs=pl.BlockSpec((TB, L), lambda i: (i, 0)),
            compiler_params=pltpu.CompilerParams(
                dimension_semantics=("parallel",),         # shard batch steps on v7x
                vmem_limit_bytes=_vmem_limit_bytes(
                    TB, L, H, x.dtype, x.dtype, compute_dtype, weight_bufs),
            ),
            cost_estimate=cost,
        )

    args = (x, w1, b1, w2, b2, w3, b3)
    try:
        return build(single_buffer_weights=True)(*args)
    except Exception:
        # Fallback for jax versions where pipeline_mode / Buffered(1) is not
        # supported by the auto-pipeliner: default double-buffered weights.
        return build(single_buffer_weights=False)(*args)


# ---------------------------------------------------------------------------
# Params
# ---------------------------------------------------------------------------
def init_params(key, L, dtype=jnp.float32):
    """f32 master params matching nn.Linear fan-in init; weights stored (in, out)."""
    H = 4 * L
    ks = jax.random.split(key, 6)

    def uniform(k, shape, fan_in):
        bound = 1.0 / jnp.sqrt(fan_in)
        return jax.random.uniform(k, shape, dtype, -bound, bound)

    w1 = uniform(ks[0], (L, H), L)
    b1 = uniform(ks[1], (1, H), L)
    w2 = uniform(ks[2], (H, H), H)
    b2 = uniform(ks[3], (1, H), H)
    w3 = uniform(ks[4], (H, L), H)
    b3 = uniform(ks[5], (1, L), H)
    return w1, b1, w2, b2, w3, b3


def to_compute_params(params, compute_dtype=jnp.bfloat16):
    """One-time cached cast: weights -> bf16 (MXU-native), biases stay f32."""
    w1, b1, w2, b2, w3, b3 = params
    cp = (w1.astype(compute_dtype), b1.astype(jnp.float32),
          w2.astype(compute_dtype), b2.astype(jnp.float32),
          w3.astype(compute_dtype), b3.astype(jnp.float32))
    return jax.block_until_ready(cp)


def reference_forward(x, w1, b1, w2, b2, w3, b3):
    """Plain-JAX reference with the same bf16-operand / f32-accumulate recipe."""
    h = jnp.dot(x.astype(w1.dtype), w1, preferred_element_type=jnp.float32)
    h = jnp.maximum(h + b1, 0.0)
    h = jnp.dot(h.astype(w2.dtype), w2, preferred_element_type=jnp.float32)
    h = jnp.maximum(h + b2, 0.0)
    out = jnp.dot(h.astype(w3.dtype), w3, preferred_element_type=jnp.float32)
    return (out + b3).astype(x.dtype)


# ---------------------------------------------------------------------------
# Demo / self-test
# ---------------------------------------------------------------------------
if __name__ == "__main__":
    B, L = 64, 32      # hidden H = 128; TB = 32 -> nb = 2 (even, both v7x TCs busy)

    key = jax.random.PRNGKey(0)
    kx, kp = jax.random.split(key)
    x = jax.random.normal(kx, (B, L), jnp.float32)

    master = init_params(kp, L)           # f32 masters (PyTorch-equivalent params)
    compute = to_compute_params(master)   # cached ONCE: bf16 weights / f32 biases

    out = jax.block_until_ready(mlp_forward(x, *compute))
    assert out.shape == (B, L)

    # Tight check vs a bf16-matched JAX reference ...
    ref_bf16 = reference_forward(x, *compute)
    assert jnp.allclose(out, ref_bf16, atol=2e-2, rtol=2e-2), "mismatch vs bf16 reference"

    # ... and a loose check vs full-f32 math with the master weights
    # (accounts for bf16 operand rounding).
    w1, b1, w2, b2, w3, b3 = master
    h = jnp.maximum(x @ w1 + b1, 0.0)
    h = jnp.maximum(h @ w2 + b2, 0.0)
    ref_f32 = h @ w3 + b3
    assert jnp.allclose(out, ref_f32, atol=1e-1, rtol=5e-2), "mismatch vs f32 reference"

    print("KERNEL_OK")
</pallas_src>

<mosaic_0001>
module attributes {stable_mosaic.version = 11 : i64} {
  func.func @mlp_kernel(%arg0: i32, %arg1: memref<32x32xf32, #tpu.memory_space<vmem>>, %arg2: memref<32x128xbf16, #tpu.memory_space<vmem>>, %arg3: memref<1x128xf32, #tpu.memory_space<vmem>>, %arg4: memref<128x128xbf16, #tpu.memory_space<vmem>>, %arg5: memref<1x128xf32, #tpu.memory_space<vmem>>, %arg6: memref<128x32xbf16, #tpu.memory_space<vmem>>, %arg7: memref<1x32xf32, #tpu.memory_space<vmem>>, %arg8: memref<32x32xf32, #tpu.memory_space<vmem>>) attributes {dimension_semantics = [#tpu.dimension_semantics<parallel>], iteration_bounds = array<i64: 2>, scalar_prefetch = 0 : i64, scratch_operands = 0 : i64, tpu.core_type = #tpu.core_type<tc>, window_params = [{transform_indices = @transform_0, window_bounds = array<i64: 32, 32>}, {pipeline_mode = #tpu.pipeline_mode<synchronous>, transform_indices = @transform_1, window_bounds = array<i64: 32, 128>}, {pipeline_mode = #tpu.pipeline_mode<synchronous>, transform_indices = @transform_2, window_bounds = array<i64: 1, 128>}, {pipeline_mode = #tpu.pipeline_mode<synchronous>, transform_indices = @transform_3, window_bounds = array<i64: 128, 128>}, {pipeline_mode = #tpu.pipeline_mode<synchronous>, transform_indices = @transform_4, window_bounds = array<i64: 1, 128>}, {pipeline_mode = #tpu.pipeline_mode<synchronous>, transform_indices = @transform_5, window_bounds = array<i64: 128, 32>}, {pipeline_mode = #tpu.pipeline_mode<synchronous>, transform_indices = @transform_6, window_bounds = array<i64: 1, 32>}, {transform_indices = @transform_7, window_bounds = array<i64: 32, 32>}]} {
    %c0 = arith.constant 0 : index
    %c0_0 = arith.constant 0 : index
    %0 = vector.load %arg1[%c0, %c0_0] : memref<32x32xf32, #tpu.memory_space<vmem>>, vector<32x32xf32>
    %1 = arith.truncf %0 : vector<32x32xf32> to vector<32x32xbf16>
    %c0_1 = arith.constant 0 : index
    %c0_2 = arith.constant 0 : index
    %2 = vector.load %arg2[%c0_1, %c0_2] : memref<32x128xbf16, #tpu.memory_space<vmem>>, vector<32x128xbf16>
    %cst = arith.constant dense<0.000000e+00> : vector<32x128xf32>
    %3 = tpu.matmul %1, %2, %cst {dimension_numbers = #tpu.dot_dimension_numbers<[1], [0], [0], [1], [0, 0, 1, 1], [], []>} : vector<32x32xbf16>, vector<32x128xbf16>, vector<32x128xf32> -> vector<32x128xf32>
    %c0_3 = arith.constant 0 : index
    %c0_4 = arith.constant 0 : index
    %4 = vector.load %arg3[%c0_3, %c0_4] : memref<1x128xf32, #tpu.memory_space<vmem>>, vector<1x128xf32>
    %5 = vector.broadcast %4 : vector<1x128xf32> to vector<32x128xf32>
    %6 = arith.addf %3, %5 : vector<32x128xf32>
    %cst_5 = arith.constant 0.000000e+00 : f32
    %7 = vector.broadcast %cst_5 : f32 to vector<32x128xf32>
    %8 = arith.maximumf %6, %7 : vector<32x128xf32>
    %9 = arith.truncf %8 : vector<32x128xf32> to vector<32x128xbf16>
    %c0_6 = arith.constant 0 : index
    %c0_7 = arith.constant 0 : index
    %10 = vector.load %arg4[%c0_6, %c0_7] : memref<128x128xbf16, #tpu.memory_space<vmem>>, vector<128x128xbf16>
    %cst_8 = arith.constant dense<0.000000e+00> : vector<32x128xf32>
    %11 = tpu.matmul %9, %10, %cst_8 {dimension_numbers = #tpu.dot_dimension_numbers<[1], [0], [0], [1], [0, 0, 1, 1], [], []>} : vector<32x128xbf16>, vector<128x128xbf16>, vector<32x128xf32> -> vector<32x128xf32>
    %c0_9 = arith.constant 0 : index
    %c0_10 = arith.constant 0 : index
    %12 = vector.load %arg5[%c0_9, %c0_10] : memref<1x128xf32, #tpu.memory_space<vmem>>, vector<1x128xf32>
    %13 = vector.broadcast %12 : vector<1x128xf32> to vector<32x128xf32>
    %14 = arith.addf %11, %13 : vector<32x128xf32>
    %cst_11 = arith.constant 0.000000e+00 : f32
    %15 = vector.broadcast %cst_11 : f32 to vector<32x128xf32>
    %16 = arith.maximumf %14, %15 : vector<32x128xf32>
    %17 = arith.truncf %16 : vector<32x128xf32> to vector<32x128xbf16>
    %c0_12 = arith.constant 0 : index
    %c0_13 = arith.constant 0 : index
    %18 = vector.load %arg6[%c0_12, %c0_13] : memref<128x32xbf16, #tpu.memory_space<vmem>>, vector<128x32xbf16>
    %cst_14 = arith.constant dense<0.000000e+00> : vector<32x32xf32>
    %19 = tpu.matmul %17, %18, %cst_14 {dimension_numbers = #tpu.dot_dimension_numbers<[1], [0], [0], [1], [0, 0, 1, 1], [], []>} : vector<32x128xbf16>, vector<128x32xbf16>, vector<32x32xf32> -> vector<32x32xf32>
    %c0_15 = arith.constant 0 : index
    %c0_16 = arith.constant 0 : index
    %20 = vector.load %arg7[%c0_15, %c0_16] : memref<1x32xf32, #tpu.memory_space<vmem>>, vector<1x32xf32>
    %21 = vector.broadcast %20 : vector<1x32xf32> to vector<32x32xf32>
    %22 = arith.addf %19, %21 : vector<32x32xf32>
    %c0_17 = arith.constant 0 : index
    %c0_18 = arith.constant 0 : index
    %23 = vector.load %arg8[%c0_17, %c0_18] : memref<32x32xf32, #tpu.memory_space<vmem>>, vector<32x32xf32>
    tpu.vector_store %arg8[%c0_17, %c0_18], %22 {strides = array<i32>} : memref<32x32xf32, #tpu.memory_space<vmem>>, vector<32x32xf32>,
    return
  }
  func.func @transform_0(%arg0: i32) -> (i32, i32) {
    %c0_i32 = arith.constant 0 : i32
    %c0_i32_0 = arith.constant 0 : i32
    return %arg0, %c0_i32 : i32, i32
  }
  func.func @transform_1(%arg0: i32) -> (i32, i32) {
    %c0_i32 = arith.constant 0 : i32
    %c0_i32_0 = arith.constant 0 : i32
    %c0_i32_1 = arith.constant 0 : i32
    return %c0_i32, %c0_i32_0 : i32, i32
  }
  func.func @transform_2(%arg0: i32) -> (i32, i32) {
    %c0_i32 = arith.constant 0 : i32
    %c0_i32_0 = arith.constant 0 : i32
    %c0_i32_1 = arith.constant 0 : i32
    return %c0_i32, %c0_i32_0 : i32, i32
  }
  func.func @transform_3(%arg0: i32) -> (i32, i32) {
    %c0_i32 = arith.constant 0 : i32
    %c0_i32_0 = arith.constant 0 : i32
    %c0_i32_1 = arith.constant 0 : i32
    return %c0_i32, %c0_i32_0 : i32, i32
  }
  func.func @transform_4(%arg0: i32) -> (i32, i32) {
    %c0_i32 = arith.constant 0 : i32
    %c0_i32_0 = arith.constant 0 : i32
    %c0_i32_1 = arith.constant 0 : i32
    return %c0_i32, %c0_i32_0 : i32, i32
  }
  func.func @transform_5(%arg0: i32) -> (i32, i32) {
    %c0_i32 = arith.constant 0 : i32
    %c0_i32_0 = arith.constant 0 : i32
    %c0_i32_1 = arith.constant 0 : i32
    return %c0_i32, %c0_i32_0 : i32, i32
  }
  func.func @transform_6(%arg0: i32) -> (i32, i32) {
    %c0_i32 = arith.constant 0 : i32
    %c0_i32_0 = arith.constant 0 : i32
    %c0_i32_1 = arith.constant 0 : i32
    return %c0_i32, %c0_i32_0 : i32, i32
  }
  func.func @transform_7(%arg0: i32) -> (i32, i32) {
    %c0_i32 = arith.constant 0 : i32
    %c0_i32_0 = arith.constant 0 : i32
    return %arg0, %c0_i32 : i32, i32
  }
}

module attributes {stable_mosaic.version = 11 : i64} {
  func.func @mlp_kernel(%arg0: i32, %arg1: memref<32x32xf32, #tpu.memory_space<vmem>>, %arg2: memref<32x128xbf16, #tpu.memory_space<vmem>>, %arg3: memref<1x128xf32, #tpu.memory_space<vmem>>, %arg4: memref<128x128xbf16, #tpu.memory_space<vmem>>, %arg5: memref<1x128xf32, #tpu.memory_space<vmem>>, %arg6: memref<128x32xbf16, #tpu.memory_space<vmem>>, %arg7: memref<1x32xf32, #tpu.memory_space<vmem>>, %arg8: memref<32x32xf32, #tpu.memory_space<vmem>>) attributes {dimension_semantics = [#tpu.dimension_semantics<parallel>], iteration_bounds = array<i64: 2>, scalar_prefetch = 0 : i64, scratch_operands = 0 : i64, tpu.core_type = #tpu.core_type<tc>, window_params = [{transform_indices = @transform_0, window_bounds = array<i64: 32, 32>}, {pipeline_mode = #tpu.pipeline_mode<synchronous>, transform_indices = @transform_1, window_bounds = array<i64: 32, 128>}, {pipeline_mode = #tpu.pipeline_mode<synchronous>, transform_indices = @transform_2, window_bounds = array<i64: 1, 128>}, {pipeline_mode = #tpu.pipeline_mode<synchronous>, transform_indices = @transform_3, window_bounds = array<i64: 128, 128>}, {pipeline_mode = #tpu.pipeline_mode<synchronous>, transform_indices = @transform_4, window_bounds = array<i64: 1, 128>}, {pipeline_mode = #tpu.pipeline_mode<synchronous>, transform_indices = @transform_5, window_bounds = array<i64: 128, 32>}, {pipeline_mode = #tpu.pipeline_mode<synchronous>, transform_indices = @transform_6, window_bounds = array<i64: 1, 32>}, {transform_indices = @transform_7, window_bounds = array<i64: 32, 32>}]} {
    %c0 = arith.constant 0 : index
    %c0_0 = arith.constant 0 : index
    %0 = vector.load %arg1[%c0, %c0_0] : memref<32x32xf32, #tpu.memory_space<vmem>>, vector<32x32xf32>
    %1 = arith.truncf %0 : vector<32x32xf32> to vector<32x32xbf16>
    %c0_1 = arith.constant 0 : index
    %c0_2 = arith.constant 0 : index
    %2 = vector.load %arg2[%c0_1, %c0_2] : memref<32x128xbf16, #tpu.memory_space<vmem>>, vector<32x128xbf16>
    %cst = arith.constant dense<0.000000e+00> : vector<32x128xf32>
    %3 = tpu.matmul %1, %2, %cst {dimension_numbers = #tpu.dot_dimension_numbers<[1], [0], [0], [1], [0, 0, 1, 1], [], []>} : vector<32x32xbf16>, vector<32x128xbf16>, vector<32x128xf32> -> vector<32x128xf32>
    %c0_3 = arith.constant 0 : index
    %c0_4 = arith.constant 0 : index
    %4 = vector.load %arg3[%c0_3, %c0_4] : memref<1x128xf32, #tpu.memory_space<vmem>>, vector<1x128xf32>
    %5 = vector.broadcast %4 : vector<1x128xf32> to vector<32x128xf32>
    %6 = arith.addf %3, %5 : vector<32x128xf32>
    %cst_5 = arith.constant 0.000000e+00 : f32
    %7 = vector.broadcast %cst_5 : f32 to vector<32x128xf32>
    %8 = arith.maximumf %6, %7 : vector<32x128xf32>
    %9 = arith.truncf %8 : vector<32x128xf32> to vector<32x128xbf16>
    %c0_6 = arith.constant 0 : index
    %c0_7 = arith.constant 0 : index
    %10 = vector.load %arg4[%c0_6, %c0_7] : memref<128x128xbf16, #tpu.memory_space<vmem>>, vector<128x128xbf16>
    %cst_8 = arith.constant dense<0.000000e+00> : vector<32x128xf32>
    %11 = tpu.matmul %9, %10, %cst_8 {dimension_numbers = #tpu.dot_dimension_numbers<[1], [0], [0], [1], [0, 0, 1, 1], [], []>} : vector<32x128xbf16>, vector<128x128xbf16>, vector<32x128xf32> -> vector<32x128xf32>
    %c0_9 = arith.constant 0 : index
    %c0_10 = arith.constant 0 : index
    %12 = vector.load %arg5[%c0_9, %c0_10] : memref<1x128xf32, #tpu.memory_space<vmem>>, vector<1x128xf32>
    %13 = vector.broadcast %12 : vector<1x128xf32> to vector<32x128xf32>
    %14 = arith.addf %11, %13 : vector<32x128xf32>
    %cst_11 = arith.constant 0.000000e+00 : f32
    %15 = vector.broadcast %cst_11 : f32 to vector<32x128xf32>
    %16 = arith.maximumf %14, %15 : vector<32x128xf32>
    %17 = arith.truncf %16 : vector<32x128xf32> to vector<32x128xbf16>
    %c0_12 = arith.constant 0 : index
    %c0_13 = arith.constant 0 : index
    %18 = vector.load %arg6[%c0_12, %c0_13] : memref<128x32xbf16, #tpu.memory_space<vmem>>, vector<128x32xbf16>
    %cst_14 = arith.constant dense<0.000000e+00> : vector<32x32xf32>
    %19 = tpu.matmul %17, %18, %cst_14 {dimension_numbers = #tpu.dot_dimension_numbers<[1], [0], [0], [1], [0, 0, 1, 1], [], []>} : vector<32x128xbf16>, vector<128x32xbf16>, vector<32x32xf32> -> vector<32x32xf32>
    %c0_15 = arith.constant 0 : index
    %c0_16 = arith.constant 0 : index
    %20 = vector.load %arg7[%c0_15, %c0_16] : memref<1x32xf32, #tpu.memory_space<vmem>>, vector<1x32xf32>
    %21 = vector.broadcast %20 : vector<1x32xf32> to vector<32x32xf32>
    %22 = arith.addf %19, %21 : vector<32x32xf32>
    %c0_17 = arith.constant 0 : index
    %c0_18 = arith.constant 0 : index
    %23 = vector.load %arg8[%c0_17, %c0_18] : memref<32x32xf32, #tpu.memory_space<vmem>>, vector<32x32xf32>
    tpu.vector_store %arg8[%c0_17, %c0_18], %22 {strides = array<i32>} : memref<32x32xf32, #tpu.memory_space<vmem>>, vector<32x32xf32>,
    return
  }
  func.func @transform_0(%arg0: i32) -> (i32, i32) {
    %c0_i32 = arith.constant 0 : i32
    %c0_i32_0 = arith.constant 0 : i32
    return %arg0, %c0_i32 : i32, i32
  }
  func.func @transform_1(%arg0: i32) -> (i32, i32) {
    %c0_i32 = arith.constant 0 : i32
    %c0_i32_0 = arith.constant 0 : i32
    %c0_i32_1 = arith.constant 0 : i32
    return %c0_i32, %c0_i32_0 : i32, i32
  }
  func.func @transform_2(%arg0: i32) -> (i32, i32) {
    %c0_i32 = arith.constant 0 : i32
    %c0_i32_0 = arith.constant 0 : i32
    %c0_i32_1 = arith.constant 0 : i32
    return %c0_i32, %c0_i32_0 : i32, i32
  }
  func.func @transform_3(%arg0: i32) -> (i32, i32) {
    %c0_i32 = arith.constant 0 : i32
    %c0_i32_0 = arith.constant 0 : i32
    %c0_i32_1 = arith.constant 0 : i32
    return %c0_i32, %c0_i32_0 : i32, i32
  }
  func.func @transform_4(%arg0: i32) -> (i32, i32) {
    %c0_i32 = arith.constant 0 : i32
    %c0_i32_0 = arith.constant 0 : i32
    %c0_i32_1 = arith.constant 0 : i32
    return %c0_i32, %c0_i32_0 : i32, i32
  }
  func.func @transform_5(%arg0: i32) -> (i32, i32) {
    %c0_i32 = arith.constant 0 : i32
    %c0_i32_0 = arith.constant 0 : i32
    %c0_i32_1 = arith.constant 0 : i32
    return %c0_i32, %c0_i32_0 : i32, i32
  }
  func.func @transform_6(%arg0: i32) -> (i32, i32) {
    %c0_i32 = arith.constant 0 : i32
    %c0_i32_0 = arith.constant 0 : i32
    %c0_i32_1 = arith.constant 0 : i32
    return %c0_i32, %c0_i32_0 : i32, i32
  }
  func.func @transform_7(%arg0: i32) -> (i32, i32) {
    %c0_i32 = arith.constant 0 : i32
    %c0_i32_0 = arith.constant 0 : i32
    return %arg0, %c0_i32 : i32, i32
  }
}

</mosaic_0001>

<bundles_post_ra>
// kernel: tpu_custom_call.1
= control target key start
LH: loop header
LB: loop body
LE: loop exit
PB: predicated region body
PF: predicated region fallthrough
CT: control target
= control target key end

     0   :  { %s860_s24 = smov 0   ;;  %s953_s0 = inlined_call_operand.vmem [shape: f32[64,32], index: 0, kind: input, shape index: {}]   ;;  %s954_s1 = inlined_call_operand.vmem [shape: bf16[32,128], index: 1, kind: input, shape index: {}]   ;;  %s955_s2 = inlined_call_operand.vmem [shape: f32[1,128], index: 2, kind: input, shape index: {}]   ;;  %s956_s3 = inlined_call_operand.vmem [shape: bf16[128,128], index: 3, kind: input, shape index: {}]   ;;  %s957_s4 = inlined_call_operand.vmem [shape: f32[1,128], index: 4, kind: input, shape index: {}]   ;;  %s958_s5 = inlined_call_operand.vmem [shape: bf16[128,32], index: 5, kind: input, shape index: {}]   ;;  %s959_s6 = inlined_call_operand.vmem [shape: f32[1,32], index: 6, kind: input, shape index: {}]   ;;  %s960_s7 = inlined_call_operand.vmem [shape: f32[64,32], index: 7, kind: output, shape index: {}]  }
   0x1 LB: > { %s680_s25 = sadd.s32 4294967295, %s818_s24   ;;  %p684_p0 = scmp.ge.s32.totalorder %s818_s24, 1  ;;  %s818_s24 = sphi %s860_s24, %s17_s24  }
   0x2   : > { %p238_p1 = scmp.lt.s32.totalorder %s818_s24, 3 }
   0x4   : > { %p239_p2 = pnand %p684_p0, %p238_p1 }
   0x5   : > { %v794_v0 = vld [vmem:[%s954_s1] sm:$0xff] (!%p239_p2)   ;;  %s685_s28 = sshll.u32 (!%p239_p2), %s680_s25, 2  ;;  %v795_v1 = vld [vmem:[%s954_s1 + $0x8] sm:$0xff] (!%p239_p2)   ;;  %v798_v4 = vld [vmem:[%s956_s3 + $0x10] sm:$0xff] (!%p239_p2)   ;;  %vm312_vm0 = vcmask (!%p239_p2), 261120  }
   0x6   : > { %242 = sbr.rel (%p239_p2) target bundleno = 682 (0x2aa), region = 48  ;;  %p271_p3 = scmp.lt.s32.totalorder (!%p239_p2), %s685_s28, 7  ;;  %738 = vmatprep.subr.bf16.mxu0 (!%p239_p2), %v794_v0  ;;  %v796_v2 = vld [vmem:[%s956_s3] sm:$0xff] (!%p239_p2)   ;;  %v797_v3 = vld [vmem:[%s956_s3 + $0x8] sm:$0xff] (!%p239_p2)   ;;  %v799_v11 = vld [vmem:[%s956_s3 + $0x18] sm:$0xff] (!%p239_p2)  }
   0x7   : > { %739 = vmatpush3.bf16.msra.mxu0 (!%p239_p2), %v794_v0  ;;  %746 = vmatprep.subr.bf16.mxu1 (!%p239_p2), %v796_v2  ;;  %v800_v12 = vld [vmem:[%s956_s3 + $0x20] sm:$0xff] (!%p239_p2)   ;;  %v801_v13 = vld [vmem:[%s956_s3 + $0x28] sm:$0xff] (!%p239_p2)   ;;  %v802_v14 = vld [vmem:[%s956_s3 + $0x30] sm:$0xff] (!%p239_p2)  }
   0x8   : > { %740 = vmatprep.subr.bf16.mxu0 (!%p239_p2), %v795_v1  ;;  %747 = vmatpush3.bf16.msra.mxu1 (!%p239_p2), %v796_v2  ;;  %v803_v15 = vld [vmem:[%s956_s3 + $0x38] sm:$0xff] (!%p239_p2)   ;;  %v804_v16 = vld [vmem:[%s958_s5] sm:$0xff] (!%p239_p2)   ;;  %v805_v17 = vld [vmem:[%s958_s5 + $0x8] sm:$0xff] (!%p239_p2)  }
   0x9   : > { %748 = vmatprep.subr.bf16.mxu1 (!%p239_p2), %v797_v3  ;;  %v806_v18 = vld [vmem:[%s958_s5 + $0x10] sm:$0xff] (!%p239_p2)   ;;  %v807_v19 = vld [vmem:[%s958_s5 + $0x18] sm:$0xff] (!%p239_p2)   ;;  %v808_v20 = vld [vmem:[%s958_s5 + $0x20] sm:$0xff] (!%p239_p2)  }
   0xa   : > { %v809_v21 = vld [vmem:[%s958_s5 + $0x28] sm:$0xff] (!%p239_p2)   ;;  %v689_v22 = vld [vmem:[%s955_s2] ss:$0 sm:$0xff] (!%p239_p2)  ;;  %v810_v37 = vld [vmem:[%s958_s5 + $0x30] sm:$0xff] (!%p239_p2)  }
   0xb   : > { %741 = vmatpush3.bf16.msra.mxu0 (!%p239_p2), %v795_v1  ;;  %v811_v38 = vld [vmem:[%s958_s5 + $0x38] sm:$0xff] (!%p239_p2)   ;;  %v694_v39 = vld [vmem:[%s957_s4] ss:$0 sm:$0xff] (!%p239_p2) }
   0xc   : > { %749 = vmatpush3.bf16.msra.mxu1 (!%p239_p2), %v797_v3  ;;  %766 = vmatprep.subr.bf16.mxu0 (!%p239_p2), %v804_v16  ;;  %v703_v54 = vld [vmem:[%s959_s6] ss:$0 sm:$0xff] (!%p239_p2) }
   0xd   : > { %s962_s28 = smov (!%p271_p3, %s685_s28), 7  ;;  %750 = vmatprep.subr.bf16.mxu1 %v798_v4 }
   0xe   : > { %s686_s12 = sshll.u32 %s962_s28, 3 }
   0xf   : > { %s274_s15 = scalar_lea.vmem %s953_s0, %s686_s12  ;;  %s280_s11 = scalar_lea.vmem %s960_s7, %s686_s12 }
  0x10   : > { %v283_v5 = vld [vmem:[%s274_s15] sm:$0xff]  ;;  %v284_v6 = vld [vmem:[%s274_s15 + $0x8] sm:$0xff]  ;;  %v285_v7 = vld [vmem:[%s274_s15 + $0x10] sm:$0xff]  ;;  %751 = vmatpush3.bf16.msra.mxu1 %v798_v4 }
  0x11   : > { %v287_v8 = vpack.c.bf16 %v284_v6, %v283_v5  ;;  %v286_v9 = vld [vmem:[%s274_s15 + $0x18] sm:$0xff]  ;;  %752 = vmatprep.subr.bf16.mxu1 %v799_v11 }
  0x12   : > { %v288_v10 = vpack.c.bf16 %v286_v9, %v285_v7 }
  0x13   : > { %742 = vmatprep.mubr.msk.bf16.mxu0 %vm312_vm0, %v287_v8 }
  0x14   : > { %743 = vmatmul.mubr.msk.bf16.vlgmr.msra.gmra.mrb[0].mxu0 %vm312_vm0, %v288_v10  ;;  %753 = vmatpush3.bf16.msra.mxu1 %v799_v11 }
  0x15   : > { %754 = vmatprep.subr.bf16.mxu1 %v800_v12  ;;  %767 = vmatpush3.bf16.msra.mxu0 %v804_v16 }
  0x16   : > { %768 = vmatprep.subr.bf16.mxu0 %v805_v17 }
  0x18   : > { %755 = vmatpush3.bf16.msra.mxu1 %v800_v12 }
  0x19   : > { %756 = vmatprep.subr.bf16.mxu1 %v801_v13  ;;  %769 = vmatpush3.bf16.msra.mxu0 %v805_v17 }
  0x1a   : > { %770 = vmatprep.subr.bf16.mxu0 %v806_v18 }
  0x1c   : > { %757 = vmatpush3.bf16.msra.mxu1 %v801_v13 }
  0x1d   : > { %758 = vmatprep.subr.bf16.mxu1 %v802_v14  ;;  %771 = vmatpush3.bf16.msra.mxu0 %v806_v18 }
  0x1e   : > { %772 = vmatprep.subr.bf16.mxu0 %v807_v19 }
  0x20   : > { %759 = vmatpush3.bf16.msra.mxu1 %v802_v14 }
  0x21   : > { %760 = vmatprep.subr.bf16.mxu1 %v803_v15  ;;  %773 = vmatpush3.bf16.msra.mxu0 %v807_v19 }
  0x22   : > { %774 = vmatprep.subr.bf16.mxu0 %v808_v20 }
  0x24   : > { %761 = vmatpush3.bf16.msra.mxu1 %v803_v15 }
  0x25   : > { %775 = vmatpush3.bf16.msra.mxu0 %v808_v20 }
  0x26   : > { %776 = vmatprep.subr.bf16.mxu0 %v809_v21 }
  0x29   : > { %777 = vmatpush3.bf16.msra.mxu0 %v809_v21 }
  0x2a   : > { %778 = vmatprep.subr.bf16.mxu0 %v810_v37 }
  0x2d   : > { %779 = vmatpush3.bf16.msra.mxu0 %v810_v37 }
  0x2e   : > { %780 = vmatprep.subr.bf16.mxu0 %v811_v38 }
  0x31   : > { %781 = vmatpush3.bf16.msra.mxu0 %v811_v38 }
  0xe7   : > { %v744_v23 = vpop.f32.mrb[0].mxu0 }
  0xe8   : > { %v362_v24 = vadd.f32 %v744_v23, %v689_v22  ;;  %v353_v25 = vpop.f32.mrb[1].mxu0 }
  0xe9   : > { %v354_v26 = vadd.f32 %v689_v22, %v353_v25  ;;  %v745_v27 = vpop.f32.mrb[2].mxu0 }
  0xea   : > { %v365_v28 = vadd.f32 %v745_v27, %v689_v22  ;;  %v356_v29 = vpop.f32.mrb[3].mxu0  ;;  %v370_v31 = vmax.f32 %v362_v24, 0.0 }
  0xeb   : > { %v357_v30 = vadd.f32 %v689_v22, %v356_v29  ;;  %v368_v33 = vmax.f32 %v354_v26, 0.0 }
  0xec   : > { %v371_v32 = vmax.f32 %v365_v28, 0.0 }
  0xed   : > { %v369_v34 = vmax.f32 %v357_v30, 0.0 }
  0xee   : > { %v373_v35 = vpack.c.bf16 %v371_v32, %v370_v31 }
  0xef   : > { %v372_v36 = vpack.c.bf16 %v369_v34, %v368_v33 }
  0xf1   : > { %762 = vmatprep.mubr.bf16.mxu1 %v372_v36 }
  0xf2   : > { %763 = vmatmul.mubr.bf16.vlgmr.msra.gmra.mrb[0].mxu1 %v373_v35 }
 0x1c5   : > { %v764_v40 = vpop.f32.mrb[0].mxu1 }
 0x1c6   : > { %v488_v41 = vadd.f32 %v764_v40, %v694_v39  ;;  %v479_v42 = vpop.f32.mrb[1].mxu1 }
 0x1c7   : > { %v480_v43 = vadd.f32 %v694_v39, %v479_v42  ;;  %v765_v44 = vpop.f32.mrb[2].mxu1 }
 0x1c8   : > { %v491_v45 = vadd.f32 %v765_v44, %v694_v39  ;;  %v482_v46 = vpop.f32.mrb[3].mxu1  ;;  %v496_v48 = vmax.f32 %v488_v41, 0.0 }
 0x1c9   : > { %v483_v47 = vadd.f32 %v694_v39, %v482_v46  ;;  %v494_v50 = vmax.f32 %v480_v43, 0.0 }
 0x1ca   : > { %v497_v49 = vmax.f32 %v491_v45, 0.0 }
 0x1cb   : > { %v495_v51 = vmax.f32 %v483_v47, 0.0 }
 0x1cc   : > { %v499_v52 = vpack.c.bf16 %v497_v49, %v496_v48 }
 0x1cd   : > { %v498_v53 = vpack.c.bf16 %v495_v51, %v494_v50 }
 0x1cf   : > { %782 = vmatprep.mubr.bf16.mxu0 %v498_v53 }
 0x1d0   : > { %783 = vmatmul.mubr.bf16.vlgmr.msra.gmra.mrb[4].mxu0 %v499_v52 }
 0x2a3   : > { %v784_v55 = vpop.f32.mrb[4].mxu0 }
 0x2a4   : > { %v605_v56 = vpop.f32.mrb[5].mxu0  ;;  %v614_v61 = vadd.f32 %v784_v55, %v703_v54 }
 0x2a5   : > { %v606_v57 = vadd.f32 %v703_v54, %v605_v56  ;;  %v785_v58 = vpop.f32.mrb[6].mxu0 }
 0x2a6   : > { %v608_v59 = vpop.f32.mrb[7].mxu0  ;;  %v617_v62 = vadd.f32 %v785_v58, %v703_v54  ;;  %622 = vst.msk [vmem:[%s280_s11 + $0x10] sm:$0xff] %vm312_vm0, %v614_v61 }
 0x2a7   : > { %620 = vst.msk [vmem:[%s280_s11] sm:$0xff] %vm312_vm0, %v606_v57  ;;  %v609_v60 = vadd.f32 %v703_v54, %v608_v59 }
 0x2a8   : > { %623 = vst.msk [vmem:[%s280_s11 + $0x18] sm:$0xff] %vm312_vm0, %v617_v62 }
 0x2a9   : > { %621 = vst.msk [vmem:[%s280_s11 + $0x8] sm:$0xff] %vm312_vm0, %v609_v60 }
 0x2aa PF: > { %s17_s24 = sadd.s32 1, %s818_s24  }
 0x2ab   : > { %p14_p4 = scmp.ge.s32.totalorder %s17_s24, 4  }
 0x2ad   :  { %16 = sbr.rel (!%p14_p4) target bundleno = 1 (0x1), region = 78 }

// kernel: tpu_custom_call.1
= control target key start
LH: loop header
LB: loop body
LE: loop exit
PB: predicated region body
PF: predicated region fallthrough
CT: control target
= control target key end

     0   :  { %s860_s24 = smov 0   ;;  %s953_s0 = inlined_call_operand.vmem [shape: f32[64,32], index: 0, kind: input, shape index: {}]   ;;  %s954_s1 = inlined_call_operand.vmem [shape: bf16[32,128], index: 1, kind: input, shape index: {}]   ;;  %s955_s2 = inlined_call_operand.vmem [shape: f32[1,128], index: 2, kind: input, shape index: {}]   ;;  %s956_s3 = inlined_call_operand.vmem [shape: bf16[128,128], index: 3, kind: input, shape index: {}]   ;;  %s957_s4 = inlined_call_operand.vmem [shape: f32[1,128], index: 4, kind: input, shape index: {}]   ;;  %s958_s5 = inlined_call_operand.vmem [shape: bf16[128,32], index: 5, kind: input, shape index: {}]   ;;  %s959_s6 = inlined_call_operand.vmem [shape: f32[1,32], index: 6, kind: input, shape index: {}]   ;;  %s960_s7 = inlined_call_operand.vmem [shape: f32[64,32], index: 7, kind: output, shape index: {}]  }
   0x1 LB: > { %s680_s25 = sadd.s32 4294967295, %s818_s24   ;;  %p684_p0 = scmp.ge.s32.totalorder %s818_s24, 1  ;;  %s818_s24 = sphi %s860_s24, %s17_s24  }
   0x2   : > { %p238_p1 = scmp.lt.s32.totalorder %s818_s24, 3 }
   0x4   : > { %p239_p2 = pnand %p684_p0, %p238_p1 }
   0x5   : > { %v794_v0 = vld [vmem:[%s954_s1] sm:$0xff] (!%p239_p2)   ;;  %s685_s28 = sshll.u32 (!%p239_p2), %s680_s25, 2  ;;  %v795_v1 = vld [vmem:[%s954_s1 + $0x8] sm:$0xff] (!%p239_p2)   ;;  %v798_v4 = vld [vmem:[%s956_s3 + $0x10] sm:$0xff] (!%p239_p2)   ;;  %vm312_vm0 = vcmask (!%p239_p2), 261120  }
   0x6   : > { %242 = sbr.rel (%p239_p2) target bundleno = 682 (0x2aa), region = 48  ;;  %p271_p3 = scmp.lt.s32.totalorder (!%p239_p2), %s685_s28, 7  ;;  %738 = vmatprep.subr.bf16.mxu0 (!%p239_p2), %v794_v0  ;;  %v796_v2 = vld [vmem:[%s956_s3] sm:$0xff] (!%p239_p2)   ;;  %v797_v3 = vld [vmem:[%s956_s3 + $0x8] sm:$0xff] (!%p239_p2)   ;;  %v799_v11 = vld [vmem:[%s956_s3 + $0x18] sm:$0xff] (!%p239_p2)  }
   0x7   : > { %739 = vmatpush3.bf16.msra.mxu0 (!%p239_p2), %v794_v0  ;;  %746 = vmatprep.subr.bf16.mxu1 (!%p239_p2), %v796_v2  ;;  %v800_v12 = vld [vmem:[%s956_s3 + $0x20] sm:$0xff] (!%p239_p2)   ;;  %v801_v13 = vld [vmem:[%s956_s3 + $0x28] sm:$0xff] (!%p239_p2)   ;;  %v802_v14 = vld [vmem:[%s956_s3 + $0x30] sm:$0xff] (!%p239_p2)  }
   0x8   : > { %740 = vmatprep.subr.bf16.mxu0 (!%p239_p2), %v795_v1  ;;  %747 = vmatpush3.bf16.msra.mxu1 (!%p239_p2), %v796_v2  ;;  %v803_v15 = vld [vmem:[%s956_s3 + $0x38] sm:$0xff] (!%p239_p2)   ;;  %v804_v16 = vld [vmem:[%s958_s5] sm:$0xff] (!%p239_p2)   ;;  %v805_v17 = vld [vmem:[%s958_s5 + $0x8] sm:$0xff] (!%p239_p2)  }
   0x9   : > { %748 = vmatprep.subr.bf16.mxu1 (!%p239_p2), %v797_v3  ;;  %v806_v18 = vld [vmem:[%s958_s5 + $0x10] sm:$0xff] (!%p239_p2)   ;;  %v807_v19 = vld [vmem:[%s958_s5 + $0x18] sm:$0xff] (!%p239_p2)   ;;  %v808_v20 = vld [vmem:[%s958_s5 + $0x20] sm:$0xff] (!%p239_p2)  }
   0xa   : > { %v809_v21 = vld [vmem:[%s958_s5 + $0x28] sm:$0xff] (!%p239_p2)   ;;  %v689_v22 = vld [vmem:[%s955_s2] ss:$0 sm:$0xff] (!%p239_p2)  ;;  %v810_v37 = vld [vmem:[%s958_s5 + $0x30] sm:$0xff] (!%p239_p2)  }
   0xb   : > { %741 = vmatpush3.bf16.msra.mxu0 (!%p239_p2), %v795_v1  ;;  %v811_v38 = vld [vmem:[%s958_s5 + $0x38] sm:$0xff] (!%p239_p2)   ;;  %v694_v39 = vld [vmem:[%s957_s4] ss:$0 sm:$0xff] (!%p239_p2) }
   0xc   : > { %749 = vmatpush3.bf16.msra.mxu1 (!%p239_p2), %v797_v3  ;;  %766 = vmatprep.subr.bf16.mxu0 (!%p239_p2), %v804_v16  ;;  %v703_v54 = vld [vmem:[%s959_s6] ss:$0 sm:$0xff] (!%p239_p2) }
   0xd   : > { %s962_s28 = smov (!%p271_p3, %s685_s28), 7  ;;  %750 = vmatprep.subr.bf16.mxu1 %v798_v4 }
   0xe   : > { %s686_s12 = sshll.u32 %s962_s28, 3 }
   0xf   : > { %s274_s15 = scalar_lea.vmem %s953_s0, %s686_s12  ;;  %s280_s11 = scalar_lea.vmem %s960_s7, %s686_s12 }
  0x10   : > { %v283_v5 = vld [vmem:[%s274_s15] sm:$0xff]  ;;  %v284_v6 = vld [vmem:[%s274_s15 + $0x8] sm:$0xff]  ;;  %v285_v7 = vld [vmem:[%s274_s15 + $0x10] sm:$0xff]  ;;  %751 = vmatpush3.bf16.msra.mxu1 %v798_v4 }
  0x11   : > { %v287_v8 = vpack.c.bf16 %v284_v6, %v283_v5  ;;  %v286_v9 = vld [vmem:[%s274_s15 + $0x18] sm:$0xff]  ;;  %752 = vmatprep.subr.bf16.mxu1 %v799_v11 }
  0x12   : > { %v288_v10 = vpack.c.bf16 %v286_v9, %v285_v7 }
  0x13   : > { %742 = vmatprep.mubr.msk.bf16.mxu0 %vm312_vm0, %v287_v8 }
  0x14   : > { %743 = vmatmul.mubr.msk.bf16.vlgmr.msra.gmra.mrb[0].mxu0 %vm312_vm0, %v288_v10  ;;  %753 = vmatpush3.bf16.msra.mxu1 %v799_v11 }
  0x15   : > { %754 = vmatprep.subr.bf16.mxu1 %v800_v12  ;;  %767 = vmatpush3.bf16.msra.mxu0 %v804_v16 }
  0x16   : > { %768 = vmatprep.subr.bf16.mxu0 %v805_v17 }
  0x18   : > { %755 = vmatpush3.bf16.msra.mxu1 %v800_v12 }
  0x19   : > { %756 = vmatprep.subr.bf16.mxu1 %v801_v13  ;;  %769 = vmatpush3.bf16.msra.mxu0 %v805_v17 }
  0x1a   : > { %770 = vmatprep.subr.bf16.mxu0 %v806_v18 }
  0x1c   : > { %757 = vmatpush3.bf16.msra.mxu1 %v801_v13 }
  0x1d   : > { %758 = vmatprep.subr.bf16.mxu1 %v802_v14  ;;  %771 = vmatpush3.bf16.msra.mxu0 %v806_v18 }
  0x1e   : > { %772 = vmatprep.subr.bf16.mxu0 %v807_v19 }
  0x20   : > { %759 = vmatpush3.bf16.msra.mxu1 %v802_v14 }
  0x21   : > { %760 = vmatprep.subr.bf16.mxu1 %v803_v15  ;;  %773 = vmatpush3.bf16.msra.mxu0 %v807_v19 }
  0x22   : > { %774 = vmatprep.subr.bf16.mxu0 %v808_v20 }
  0x24   : > { %761 = vmatpush3.bf16.msra.mxu1 %v803_v15 }
  0x25   : > { %775 = vmatpush3.bf16.msra.mxu0 %v808_v20 }
  0x26   : > { %776 = vmatprep.subr.bf16.mxu0 %v809_v21 }
  0x29   : > { %777 = vmatpush3.bf16.msra.mxu0 %v809_v21 }
  0x2a   : > { %778 = vmatprep.subr.bf16.mxu0 %v810_v37 }
  0x2d   : > { %779 = vmatpush3.bf16.msra.mxu0 %v810_v37 }
  0x2e   : > { %780 = vmatprep.subr.bf16.mxu0 %v811_v38 }
  0x31   : > { %781 = vmatpush3.bf16.msra.mxu0 %v811_v38 }
  0xe7   : > { %v744_v23 = vpop.f32.mrb[0].mxu0 }
  0xe8   : > { %v362_v24 = vadd.f32 %v744_v23, %v689_v22  ;;  %v353_v25 = vpop.f32.mrb[1].mxu0 }
  0xe9   : > { %v354_v26 = vadd.f32 %v689_v22, %v353_v25  ;;  %v745_v27 = vpop.f32.mrb[2].mxu0 }
  0xea   : > { %v365_v28 = vadd.f32 %v745_v27, %v689_v22  ;;  %v356_v29 = vpop.f32.mrb[3].mxu0  ;;  %v370_v31 = vmax.f32 %v362_v24, 0.0 }
  0xeb   : > { %v357_v30 = vadd.f32 %v689_v22, %v356_v29  ;;  %v368_v33 = vmax.f32 %v354_v26, 0.0 }
  0xec   : > { %v371_v32 = vmax.f32 %v365_v28, 0.0 }
  0xed   : > { %v369_v34 = vmax.f32 %v357_v30, 0.0 }
  0xee   : > { %v373_v35 = vpack.c.bf16 %v371_v32, %v370_v31 }
  0xef   : > { %v372_v36 = vpack.c.bf16 %v369_v34, %v368_v33 }
  0xf1   : > { %762 = vmatprep.mubr.bf16.mxu1 %v372_v36 }
  0xf2   : > { %763 = vmatmul.mubr.bf16.vlgmr.msra.gmra.mrb[0].mxu1 %v373_v35 }
 0x1c5   : > { %v764_v40 = vpop.f32.mrb[0].mxu1 }
 0x1c6   : > { %v488_v41 = vadd.f32 %v764_v40, %v694_v39  ;;  %v479_v42 = vpop.f32.mrb[1].mxu1 }
 0x1c7   : > { %v480_v43 = vadd.f32 %v694_v39, %v479_v42  ;;  %v765_v44 = vpop.f32.mrb[2].mxu1 }
 0x1c8   : > { %v491_v45 = vadd.f32 %v765_v44, %v694_v39  ;;  %v482_v46 = vpop.f32.mrb[3].mxu1  ;;  %v496_v48 = vmax.f32 %v488_v41, 0.0 }
 0x1c9   : > { %v483_v47 = vadd.f32 %v694_v39, %v482_v46  ;;  %v494_v50 = vmax.f32 %v480_v43, 0.0 }
 0x1ca   : > { %v497_v49 = vmax.f32 %v491_v45, 0.0 }
 0x1cb   : > { %v495_v51 = vmax.f32 %v483_v47, 0.0 }
 0x1cc   : > { %v499_v52 = vpack.c.bf16 %v497_v49, %v496_v48 }
 0x1cd   : > { %v498_v53 = vpack.c.bf16 %v495_v51, %v494_v50 }
 0x1cf   : > { %782 = vmatprep.mubr.bf16.mxu0 %v498_v53 }
 0x1d0   : > { %783 = vmatmul.mubr.bf16.vlgmr.msra.gmra.mrb[4].mxu0 %v499_v52 }
 0x2a3   : > { %v784_v55 = vpop.f32.mrb[4].mxu0 }
 0x2a4   : > { %v605_v56 = vpop.f32.mrb[5].mxu0  ;;  %v614_v61 = vadd.f32 %v784_v55, %v703_v54 }
 0x2a5   : > { %v606_v57 = vadd.f32 %v703_v54, %v605_v56  ;;  %v785_v58 = vpop.f32.mrb[6].mxu0 }
 0x2a6   : > { %v608_v59 = vpop.f32.mrb[7].mxu0  ;;  %v617_v62 = vadd.f32 %v785_v58, %v703_v54  ;;  %622 = vst.msk [vmem:[%s280_s11 + $0x10] sm:$0xff] %vm312_vm0, %v614_v61 }
 0x2a7   : > { %620 = vst.msk [vmem:[%s280_s11] sm:$0xff] %vm312_vm0, %v606_v57  ;;  %v609_v60 = vadd.f32 %v703_v54, %v608_v59 }
 0x2a8   : > { %623 = vst.msk [vmem:[%s280_s11 + $0x18] sm:$0xff] %vm312_vm0, %v617_v62 }
 0x2a9   : > { %621 = vst.msk [vmem:[%s280_s11 + $0x8] sm:$0xff] %vm312_vm0, %v609_v60 }
 0x2aa PF: > { %s17_s24 = sadd.s32 1, %s818_s24  }
 0x2ab   : > { %p14_p4 = scmp.ge.s32.totalorder %s17_s24, 4  }
 0x2ad   :  { %16 = sbr.rel (!%p14_p4) target bundleno = 1 (0x1), region = 78 }

</bundles_post_ra>
